<compile_context>
chip_gen: v6e
topology: v6e:2x2x1
jax: 0.10.0
libtpu: 0.0.40
codegen_flags: <defaults>
</compile_context>

<pallas_src>
import functools

import jax
import jax.numpy as jnp
from jax.experimental import pallas as pl
from jax.experimental.pallas import tpu as pltpu

_LANE = 128


def _gat_kernel(nodes_ref, scat_ref, mtgt_ref, part_ref, fused_ref, *, do_p):
    """One edge tile: gather projected nodes, relu/exp, fused Mtgt aggregation.

    nodes_ref : [2*Np, C]  bf16   [proj_src + b | proj_tgt], pad lanes = logits
    scat_ref  : [TE, 2*Np] bf16   one-hot [S_src | S_tgt] for this edge tile
    mtgt_ref  : [Np, TE]   bf16   target-incidence columns for this edge tile
    part_ref  : [Np, C]    f32    per-shard accumulator (resident across k)
    fused_ref : [TE, C]    bf16   scratch holding [y*a_exp | a_exp]
    """
    k = pl.program_id(1)

    @pl.when(k == 0)
    def _():
        part_ref[...] = jnp.zeros_like(part_ref)

    # One-hot gather + add of the bias-folded node projections:
    #   z = [S_src | S_tgt] @ [[x@Wsrc + b], [x@Wtgt]]        -> [TE, C]
    # The 128 pad lanes of z hold the stabilized attention logit replicated.
    z = jnp.dot(scat_ref[...], nodes_ref[...],
                preferred_element_type=jnp.float32)
    y = jnp.maximum(z[:, :do_p], 0.0)          # relu(f(h))       [TE, do_p]
    a_exp = jnp.exp(z[:, do_p:])               # exp(a - a_base)  [TE, 128]
    if do_p == _LANE:
        weighted = y * a_exp                   # lane-aligned per-lane VPU mul
    else:
        # TODO(synk): for do_p > 128, tile a_exp lane blocks instead of the
        # 1-lane broadcast (XLU) below.
        weighted = y * a_exp[:, 0:1]

    # Two lane-aligned slice stores into the persistent fused scratch
    # (replaces a per-iteration lane-axis concatenate).
    fused_ref[:, :do_p] = weighted.astype(fused_ref.dtype)
    fused_ref[:, do_p:] = a_exp.astype(fused_ref.dtype)

    # Fused aggregation: one MXU pass gives Mtgt @ (y*a_exp) in the first
    # do_p lanes and Mtgt @ a_exp in the pad lanes, accumulated straight into
    # the per-shard partial output (which stays resident across the edge axis).
    part_ref[...] += jnp.dot(mtgt_ref[...], fused_ref[...],
                             preferred_element_type=jnp.float32)
    # TODO(synk): torch.isnan asserts in the original forward are debug-only;
    # use pl.debug_check under pl.enable_debug_checks() if needed.


def gat_layer_edge_softmax(x, adj, src, tgt, Msrc, Mtgt, params, *,
                           eps=1e-6, edge_tile=256, num_edge_shards=2):
    """Pallas port of GATLayerEdgeSoftmax.forward.

    adj and Msrc are accepted for signature parity but unused (same as the
    PyTorch forward).
    """
    del adj, Msrc
    wf, bf, ww, bw = params            # [2di, do], [1, do], [2di, 1], [1, 1]

    N, di = x.shape
    E = int(src.shape[0])
    do = wf.shape[1]
    do_p = ((do + _LANE - 1) // _LANE) * _LANE   # lane-padded f block
    C = do_p + _LANE                             # + 128 replicated "a" lanes

    xf32 = x.astype(jnp.float32)
    src = src.astype(jnp.int32)
    tgt = tgt.astype(jnp.int32)

    # ---- Node-level fused projections (hoisted out of the kernel). --------
    # f block padded to a lane multiple so kernel slices / stores stay
    # unmasked; the 128 pad lanes carry the `w` projection replicated so the
    # attention-logit block is lane-dense.
    wf_p = jnp.pad(wf, ((0, 0), (0, do_p - do)))
    bf_p = jnp.pad(bf, ((0, 0), (0, do_p - do)))
    wsrc_cat = jnp.concatenate([wf_p[:di], jnp.tile(ww[:di], (1, _LANE))], axis=1)
    wtgt_cat = jnp.concatenate([wf_p[di:], jnp.tile(ww[di:], (1, _LANE))], axis=1)
    proj_src = xf32 @ wsrc_cat                     # [N, C] f32
    proj_tgt = xf32 @ wtgt_cat                     # [N, C] f32

    # Global softmax max (a_base) from the already-projected pad lane.
    a_edges = proj_src[src, do_p] + proj_tgt[tgt, do_p] + bw[0, 0]
    a_base = jnp.max(a_edges)

    # Fold bias (and -a_base) into the source-node rows: exact, since every
    # edge's one-hot selects exactly one src row.
    b_cat = jnp.concatenate([bf_p, jnp.tile(bw - a_base, (1, _LANE))], axis=1)
    nodes_src = proj_src + b_cat
    nodes_tgt = proj_tgt

    # ---- Padding / tiling. --------------------------------------------------
    Np = ((N + 63) // 64) * 64          # 2*Np lane-multiple => dense gather K
    NS = max(1, int(num_edge_shards))   # parallel edge shards (v7x megacore)
    per_shard = -(-E // NS)
    TE = min(((edge_tile + _LANE - 1) // _LANE) * _LANE,
             ((per_shard + _LANE - 1) // _LANE) * _LANE)
    KE = -(-per_shard // TE)            # edge tiles per shard
    Ep = NS * KE * TE

    nodes = jnp.concatenate([
        jnp.pad(nodes_src, ((0, Np - N), (0, 0))),
        jnp.pad(nodes_tgt, ((0, Np - N), (0, 0))),
    ], axis=0).astype(jnp.bfloat16)                     # [2*Np, C]

    node_ids = jnp.arange(Np, dtype=jnp.int32)
    s_src = (src[:, None] == node_ids[None, :])
    s_tgt = (tgt[:, None] == node_ids[None, :])
    scat = jnp.concatenate([s_src, s_tgt], axis=1).astype(jnp.bfloat16)
    scat = jnp.pad(scat, ((0, Ep - E), (0, 0)))   # padded edges: all-zero rows
                                                  # (and zero Mtgt columns), so
                                                  # they contribute nothing.
    mtgt = jnp.pad(Mtgt.astype(jnp.bfloat16), ((0, Np - N), (0, Ep - E)))

    grid = (NS, KE)

    # ---- Cost / VMEM bookkeeping. -------------------------------------------
    flops = 2 * Ep * (2 * Np) * C + 2 * Np * Ep * C
    transcendentals = Ep * _LANE
    bytes_accessed = (Ep * 2 * Np * 2      # scat (streamed once)
                      + Np * Ep * 2        # Mtgt (streamed once)
                      + 2 * Np * C * 2     # node projections
                      + NS * Np * C * 4)   # per-shard partial outputs
    cost = pl.CostEstimate(flops=flops, transcendentals=transcendentals,
                           bytes_accessed=bytes_accessed)

    vmem_need = (2 * (2 * Np * C * 2)      # nodes (double-buffered)
                 + 2 * (TE * 2 * Np * 2)   # scat tile
                 + 2 * (Np * TE * 2)       # Mtgt tile
                 + TE * C * 2              # fused [y*a_exp | a_exp] scratch
                 + 2 * (Np * C * 4))       # per-shard partial output block
    # Keep well inside v7x's 64 MiB physical VMEM; v5e/v6e have 128 MiB.
    vmem_limit = int(min(48 * 1024 * 1024,
                         max(16 * 1024 * 1024, 2 * vmem_need)))

    kernel = functools.partial(_gat_kernel, do_p=do_p)
    partials = pl.pallas_call(
        kernel,
        out_shape=jax.ShapeDtypeStruct((NS, Np, C), jnp.float32),
        grid_spec=pltpu.PrefetchScalarGridSpec(
            num_scalar_prefetch=0,
            grid=grid,
            in_specs=[
                pl.BlockSpec((2 * Np, C), lambda s, k: (0, 0)),            # nodes
                pl.BlockSpec((TE, 2 * Np), lambda s, k: (s * KE + k, 0)),  # [S_src|S_tgt]
                pl.BlockSpec((Np, TE), lambda s, k: (0, s * KE + k)),      # Mtgt
            ],
            out_specs=pl.BlockSpec((None, Np, C), lambda s, k: (s, 0, 0)),
            scratch_shapes=[
                pltpu.VMEM((TE, C), jnp.bfloat16),     # fused edge block
            ]),
        compiler_params=pltpu.CompilerParams(
            dimension_semantics=("parallel", "arbitrary"),
            vmem_limit_bytes=vmem_limit),
        cost_estimate=cost,
    )(nodes, scat, mtgt)

    # Combine per-shard partials and normalize (tiny [Np, C] XLA epilogue).
    acc = jnp.sum(partials, axis=0)
    a_sum = acc[:, do_p:do_p + 1] + eps        # Mtgt @ a_exp + eps
    out = acc[:, :do_p] / a_sum                # (Mtgt @ (y*a_exp)) / a_sum
    return out[:N, :do]


def _init_params(key, di, do):
    """Deterministic init matching the module's shapes (weights pre-transposed)."""
    k1, k2, k3, k4 = jax.random.split(key, 4)
    fan_in = 2 * di
    bound_f = (6.0 / (fan_in + do)) ** 0.5
    bound_w = (6.0 / (fan_in + 1)) ** 0.5
    bias_bound = 1.0 / (fan_in ** 0.5)
    wf = jax.random.uniform(k1, (fan_in, do), jnp.float32, -bound_f, bound_f)
    ww = jax.random.uniform(k2, (fan_in, 1), jnp.float32, -bound_w, bound_w)
    bf = jax.random.uniform(k3, (1, do), jnp.float32, -bias_bound, bias_bound)
    bw = jax.random.uniform(k4, (1, 1), jnp.float32, -bias_bound, bias_bound)
    return wf, bf, ww, bw


def _reference(x, src, tgt, Mtgt, params, eps):
    """Pure-f32 reference with the original PyTorch semantics."""
    wf, bf, ww, bw = params
    h = jnp.concatenate([x[src], x[tgt]], axis=1).astype(jnp.float32)
    y = jax.nn.relu(h @ wf + bf)
    a = h @ ww + bw
    a_exp = jnp.exp(a - jnp.max(a, axis=0, keepdims=True))
    a_sum = Mtgt @ a_exp + eps
    return (Mtgt @ (y * a_exp)) / a_sum


if __name__ == "__main__":
    di, do = 64, 128        # node feature dim / output dim
    N, E = 32, 256          # nodes / edges
    eps = 1e-6

    key = jax.random.PRNGKey(0)
    kx, ks, kt, kp = jax.random.split(key, 4)

    x = jax.random.normal(kx, (N, di), dtype=jnp.float32)
    src = jax.random.randint(ks, (E,), 0, N, dtype=jnp.int32)
    tgt = jax.random.randint(kt, (E,), 0, N, dtype=jnp.int32)

    node_ids = jnp.arange(N)[:, None]
    Msrc = (src[None, :] == node_ids).astype(jnp.float32)    # [N, E]
    Mtgt = (tgt[None, :] == node_ids).astype(jnp.float32)    # [N, E]
    adj = jnp.zeros((N, N), dtype=jnp.float32)               # unused by forward

    params = _init_params(kp, di, do)

    out = gat_layer_edge_softmax(x, adj, src, tgt, Msrc, Mtgt, params, eps=eps)
    out = jax.block_until_ready(out)

    ref = _reference(x, src, tgt, Mtgt, params, eps)
    assert out.shape == (N, do)
    # bf16 MXU operands -> compare against the f32 reference with loosened tol.
    max_err = float(jnp.max(jnp.abs(out - ref)))
    assert jnp.allclose(out, ref, atol=5e-2, rtol=5e-2), max_err

    print("KERNEL_OK")
</pallas_src>

<mosaic_0001>
module attributes {stable_mosaic.version = 11 : i64} {
  func.func @_gat_kernel(%arg0: i32, %arg1: i32, %arg2: memref<128x256xbf16, #tpu.memory_space<vmem>>, %arg3: memref<128x128xbf16, #tpu.memory_space<vmem>>, %arg4: memref<64x128xbf16, #tpu.memory_space<vmem>>, %arg5: memref<1x64x256xf32, #tpu.memory_space<vmem>>, %arg6: memref<128x256xbf16, #tpu.memory_space<vmem>>) attributes {dimension_semantics = [#tpu.dimension_semantics<parallel>, #tpu.dimension_semantics<arbitrary>], iteration_bounds = array<i64: 2, 1>, scalar_prefetch = 0 : i64, scratch_operands = 1 : i64, tpu.core_type = #tpu.core_type<tc>, window_params = [{pipeline_mode = #tpu.pipeline_mode<synchronous>, transform_indices = @transform_0, window_bounds = array<i64: 128, 256>}, {transform_indices = @transform_1, window_bounds = array<i64: 128, 128>}, {transform_indices = @transform_2, window_bounds = array<i64: 64, 128>}, {transform_indices = @transform_3, window_bounds = array<i64: 1, 64, 256>}]} {
    %c0_i32 = arith.constant 0 : i32
    %0 = arith.cmpi eq, %arg1, %c0_i32 : i32
    %1 = arith.extui %0 : i1 to i32
    %c0_i32_0 = arith.constant 0 : i32
    %2 = arith.cmpi ne, %1, %c0_i32_0 : i32
    scf.if %2 {
      %cst_19 = arith.constant 0.000000e+00 : f32
      %25 = vector.broadcast %cst_19 : f32 to vector<64x256xf32>
      %c0_20 = arith.constant 0 : index
      %c0_21 = arith.constant 0 : index
      %c0_22 = arith.constant 0 : index
      %26 = vector.load %arg5[%c0_20, %c0_21, %c0_22] : memref<1x64x256xf32, #tpu.memory_space<vmem>>, vector<1x64x256xf32>
      %27 = vector.shape_cast %26 : vector<1x64x256xf32> to vector<64x256xf32>
      %28 = vector.shape_cast %25 : vector<64x256xf32> to vector<1x64x256xf32>
      tpu.vector_store %arg5[%c0_20, %c0_21, %c0_22], %28 {strides = array<i32>} : memref<1x64x256xf32, #tpu.memory_space<vmem>>, vector<1x64x256xf32>,
    } else {
    }
    %c0 = arith.constant 0 : index
    %c0_1 = arith.constant 0 : index
    %3 = vector.load %arg3[%c0, %c0_1] : memref<128x128xbf16, #tpu.memory_space<vmem>>, vector<128x128xbf16>
    %c0_2 = arith.constant 0 : index
    %c0_3 = arith.constant 0 : index
    %4 = vector.load %arg2[%c0_2, %c0_3] : memref<128x256xbf16, #tpu.memory_space<vmem>>, vector<128x256xbf16>
    %cst = arith.constant dense<0.000000e+00> : vector<128x256xf32>
    %5 = tpu.matmul %3, %4, %cst {dimension_numbers = #tpu.dot_dimension_numbers<[1], [0], [0], [1], [0, 0, 1, 1], [], []>} : vector<128x128xbf16>, vector<128x256xbf16>, vector<128x256xf32> -> vector<128x256xf32>
    %6 = vector.extract_strided_slice %5 {offsets = [0, 0], sizes = [128, 128], strides = [1, 1]} : vector<128x256xf32> to vector<128x128xf32>
    %cst_4 = arith.constant 0.000000e+00 : f32
    %7 = vector.broadcast %cst_4 : f32 to vector<128x128xf32>
    %8 = arith.maximumf %6, %7 : vector<128x128xf32>
    %9 = vector.extract_strided_slice %5 {offsets = [0, 128], sizes = [128, 128], strides = [1, 1]} : vector<128x256xf32> to vector<128x128xf32>
    %10 = math.exp %9 : vector<128x128xf32>
    %11 = arith.mulf %8, %10 : vector<128x128xf32>
    %12 = arith.truncf %11 : vector<128x128xf32> to vector<128x128xbf16>
    %c0_5 = arith.constant 0 : index
    %c0_6 = arith.constant 0 : index
    %13 = vector.load %arg6[%c0_5, %c0_6] : memref<128x256xbf16, #tpu.memory_space<vmem>>, vector<128x128xbf16>
    tpu.vector_store %arg6[%c0_5, %c0_6], %12 {strides = array<i32>} : memref<128x256xbf16, #tpu.memory_space<vmem>>, vector<128x128xbf16>,
    %14 = arith.truncf %10 : vector<128x128xf32> to vector<128x128xbf16>
    %c0_7 = arith.constant 0 : index
    %c128 = arith.constant 128 : index
    %15 = vector.load %arg6[%c0_7, %c128] : memref<128x256xbf16, #tpu.memory_space<vmem>>, vector<128x128xbf16>
    tpu.vector_store %arg6[%c0_7, %c128], %14 {strides = array<i32>} : memref<128x256xbf16, #tpu.memory_space<vmem>>, vector<128x128xbf16>,
    %c0_8 = arith.constant 0 : index
    %c0_9 = arith.constant 0 : index
    %c0_10 = arith.constant 0 : index
    %16 = vector.load %arg5[%c0_8, %c0_9, %c0_10] : memref<1x64x256xf32, #tpu.memory_space<vmem>>, vector<1x64x256xf32>
    %17 = vector.shape_cast %16 : vector<1x64x256xf32> to vector<64x256xf32>
    %c0_11 = arith.constant 0 : index
    %c0_12 = arith.constant 0 : index
    %18 = vector.load %arg4[%c0_11, %c0_12] : memref<64x128xbf16, #tpu.memory_space<vmem>>, vector<64x128xbf16>
    %c0_13 = arith.constant 0 : index
    %c0_14 = arith.constant 0 : index
    %19 = vector.load %arg6[%c0_13, %c0_14] : memref<128x256xbf16, #tpu.memory_space<vmem>>, vector<128x256xbf16>
    %cst_15 = arith.constant dense<0.000000e+00> : vector<64x256xf32>
    %20 = tpu.matmul %18, %19, %cst_15 {dimension_numbers = #tpu.dot_dimension_numbers<[1], [0], [0], [1], [0, 0, 1, 1], [], []>} : vector<64x128xbf16>, vector<128x256xbf16>, vector<64x256xf32> -> vector<64x256xf32>
    %21 = arith.addf %17, %20 : vector<64x256xf32>
    %c0_16 = arith.constant 0 : index
    %c0_17 = arith.constant 0 : index
    %c0_18 = arith.constant 0 : index
    %22 = vector.load %arg5[%c0_16, %c0_17, %c0_18] : memref<1x64x256xf32, #tpu.memory_space<vmem>>, vector<1x64x256xf32>
    %23 = vector.shape_cast %22 : vector<1x64x256xf32> to vector<64x256xf32>
    %24 = vector.shape_cast %21 : vector<64x256xf32> to vector<1x64x256xf32>
    tpu.vector_store %arg5[%c0_16, %c0_17, %c0_18], %24 {strides = array<i32>} : memref<1x64x256xf32, #tpu.memory_space<vmem>>, vector<1x64x256xf32>,
    return
  }
  func.func @transform_0(%arg0: i32, %arg1: i32) -> (i32, i32) {
    %c0_i32 = arith.constant 0 : i32
    %c0_i32_0 = arith.constant 0 : i32
    %c0_i32_1 = arith.constant 0 : i32
    return %c0_i32, %c0_i32_0 : i32, i32
  }
  func.func @transform_1(%arg0: i32, %arg1: i32) -> (i32, i32) {
    %c1_i32 = arith.constant 1 : i32
    %0 = arith.muli %arg0, %c1_i32 : i32
    %1 = arith.addi %0, %arg1 : i32
    %c0_i32 = arith.constant 0 : i32
    %c0_i32_0 = arith.constant 0 : i32
    return %1, %c0_i32 : i32, i32
  }
  func.func @transform_2(%arg0: i32, %arg1: i32) -> (i32, i32) {
    %c1_i32 = arith.constant 1 : i32
    %0 = arith.muli %arg0, %c1_i32 : i32
    %1 = arith.addi %0, %arg1 : i32
    %c0_i32 = arith.constant 0 : i32
    %c0_i32_0 = arith.constant 0 : i32
    return %c0_i32, %1 : i32, i32
  }
  func.func @transform_3(%arg0: i32, %arg1: i32) -> (i32, i32, i32) {
    %c0_i32 = arith.constant 0 : i32
    %c0_i32_0 = arith.constant 0 : i32
    %c0_i32_1 = arith.constant 0 : i32
    return %arg0, %c0_i32, %c0_i32_0 : i32, i32, i32
  }
}

</mosaic_0001>

<bundles_post_ra>
// kernel: tpu_custom_call.1
= control target key start
LH: loop header
LB: loop body
LE: loop exit
PB: predicated region body
PF: predicated region fallthrough
CT: control target
= control target key end

     0   :  { %8 = vsyncpa [#allocation4], 0  ;;  %s1917_s0 = inlined_call_operand.hbm [shape: bf16[128,256], index: 0, kind: input, shape index: {}]   ;;  %s1918_s1 = inlined_call_operand.hbm [shape: bf16[256,128], index: 1, kind: input, shape index: {}]   ;;  %s1919_s2 = inlined_call_operand.hbm [shape: bf16[64,256], index: 2, kind: input, shape index: {}]   ;;  %s1920_s3 = inlined_call_operand.hbm [shape: f32[2,64,256], index: 3, kind: output, shape index: {}]  }
   0x1   :  { %9 = vsyncpa [#allocation7], 0 }
   0x2   :  { %11 = vsyncpa [#allocation7 + $0x1], 0 }
   0x3   :  { %12 = vsyncpa [#allocation5], 0 }
   0x4   :  { %14 = vsyncpa [#allocation5 + $0x1], 0  ;;  %s1664_s12 = smov 0   ;;  %s1666_s13 = smov 0  }
   0x5   :  { %s1668_s14 = smov 0   ;;  %s1670_s15 = smov 0  }
   0x6   :  { %s1672_s16 = smov 0   ;;  %s1674_s17 = smov 0  }
   0x7 LB: > { %s32_s18 = sadd.s32 1, %s1627_s16  ;;  %s62_s19 = sadd.s32 1, %s1619_s14  ;;  %s1631_s17 = sphi %s1674_s17, %s20_s17   ;;  %s1627_s16 = sphi %s1672_s16, %s1940_s16   ;;  %s1623_s15 = sphi %s1670_s15, %s1939_s15   ;;  %s1619_s14 = sphi %s1668_s14, %s1938_s14   ;;  %s1615_s13 = sphi %s1666_s13, %s1937_s13   ;;  %s1611_s12 = sphi %s1664_s12, %s1936_s12  }
   0x8   : > { %p34_p0 = scmp.ge.s32.totalorder %s32_s18, 2  ;;  %p69_p1 = scmp.ne.s32.totalorder %s1619_s14, %s1615_s13 }
   0x9   : > { %p70_p2 = scmp.eq.s32.totalorder %s1631_s17, 0  ;;  %p1313_p5 = scmp.lt.s32.totalorder %s1631_s17, 2 }
   0xa   : > { %s1942_s18 = smov (%p34_p0, %s32_s18), 0  ;;  %s166_s21 = sand.u32 1, %s1631_s17  }
   0xb   : > { %p71_p4 = por %p70_p2, %p69_p1  ;;  %s59_s20 = ssub.s32 %s1627_s16, %s1942_s18 }
   0xc   : > { %p60_p6 = scmp.eq.s32.totalorder %s59_s20, 0  ;;  %s168_s22 = sand.u32 1, %s1619_s14  }
   0xd   : > { %s1253_s23 = sshll.u32 %s1627_s16, 10  ;;  %s1162_s25 = sshll.u32 %s168_s22, 6 }
   0xe   : > { %s1712_s24 = scalar_select %p60_p6, %s1619_s14, %s62_s19  }
   0xf   : > { %s177_s28 = scalar_lea.hbm %s1918_s1, %s1253_s23  ;;  %p1717_p7 = pnand %p1313_p5, %p71_p4 }
  0x10   : > { %s170_s30 = scalar_lea.vmem [#allocation6], %s1162_s25  ;;  %s1165_s5 = sshll.u32 %s168_s22, 5 }
  0x11   : > { %s178_s4 = sshll.u32 %s170_s30, 4  ;;  %s1721_s6 = scalar_lea.sflag [#allocation7], %s166_s21  ;;  %s179_s4 = int_to_ptr.vmem [resolvable:$true] %s178_s4 }
  0x12   : > { %p1467_p8 = pneg %p1717_p7  ;;  %s1478_s7 = scalar_lea.vmem %s179_s4, 1024 }
  0x13   : > { %p1479_p9 = scmp.ne.s32.totalorder %s179_s4, %s1478_s7  ;;  %s1633_s8 = smov [#allocation6]  }
  0x14   : > { %s1483_s9 = sshll.u32 %s1633_s8, 4  ;;  %s1484_s9 = int_to_ptr.vmem [resolvable:$false] %s1483_s9 }
  0x15   : > { %p1481_p10 = pnand %p1479_p9, %p1467_p8  ;;  %s1485_s10 = scalar_lea.vmem %s1484_s9, 2048 }
  0x16   : > { %p1486_p12 = scmp.lt.s32.totalorder %s179_s4, %s1484_s9  ;;  %p1487_p13 = scmp.lt.s32.totalorder %s1485_s10, %s1478_s7 }
  0x17   : > { %p1482_p11 = pneg %p1481_p10 }
  0x18   : > { %p1488_p0 = por %p1487_p13, %p1486_p12 }
  0x1a   : > { %p1489_p2 = pnand %p1488_p0, %p1482_p11 }
  0x1c   : > { %1492 = shalt.err (!%p1489_p2)
}
  0x1d   : > { %s1921_s11 = smov 64   ;;  %s1923_s19 = smov 4  }
  0x1e   : > { %1304 = dma.hbm_to_vmem [thread:$0]  (!%p1717_p7), %s177_s28, 1024, %s179_s4, %s1721_s6, %s1921_s11, %s1921_s11, %s1923_s19  }
  0x1f   : > { %s192_s20 = scalar_lea.vmem [#allocation8], %s1165_s5  ;;  %s1735_s22 = sadd.s32 4294967295, %s1631_s17  }
  0x20   : > { %s199_s21 = sshll.u32 %s192_s20, 4  ;;  %s1158_s23 = sadd.s32 4294967294, %s1631_s17   ;;  %s200_s21 = int_to_ptr.vmem [resolvable:$true] %s199_s21 }
  0x21   : > { %p75_p4 = scmp.ne.s32.totalorder %s1615_s13, %s1611_s12  ;;  %p1922_p5 = scmp.eq.s32.totalorder %s1735_s22, 0 }
  0x22   : > { %p127_p6 = scmp.eq.s32.totalorder %s1735_s22, 1  ;;  %p133_p9 = scmp.eq.s32.totalorder %s1158_s23, 1 }
  0x23   : > { %p1159_p10 = scmp.ge.s32.totalorder %s1631_s17, 1  ;;  %p1745_p11 = por %p1922_p5, %p75_p4 }
  0x24   : > { %p1752_p12 = por %p127_p6, %p69_p1  ;;  %p1756_p13 = por %p133_p9, %p75_p4 }
  0x25   : > { %p140_p0 = scmp.lt.s32.totalorder %s1631_s17, 3  ;;  %s1636_s30 = smov [#allocation3]  }
  0x26   : > { %s1927_s27 = scalar_select %p1756_p13, 1, 0 }
  0x27   : > { %p1761_p2 = pnand %p1159_p10, %p140_p0  ;;  %s152_s4 = sshll.u32 %s1636_s30, 4  ;;  %s1765_s4 = int_to_ptr.vmem [resolvable:$true] %s152_s4 }
  0x28   : > { %s1166_s5 = sshll.u32 %s1627_s16, 6  ;;  %s1506_s20 = scalar_lea.vmem %s200_s21, 512 }
  0x29   : > { %p1297_p1 = pneg %p1761_p2  ;;  %s198_s10 = scalar_lea.hbm %s1919_s2, %s1166_s5 }
  0x2a   : > { %p1507_p4 = scmp.ne.s32.totalorder %s200_s21, %s1506_s20  ;;  %s1637_s23 = smov [#allocation8]  }
  0x2b   : > { %p1772_p6 = pnand %p1297_p1, %p1922_p5  ;;  %s1511_s30 = sshll.u32 %s1637_s23, 4  ;;  %s1512_s30 = int_to_ptr.vmem [resolvable:$false] %s1511_s30 }
  0x2c   : > { %p1509_p9 = pnand %p1507_p4, %p1467_p8  ;;  %s1513_s11 = scalar_lea.vmem %s1512_s30, 1024 }
  0x2d   : > { %p1514_p0 = scmp.lt.s32.totalorder %s200_s21, %s1512_s30  ;;  %p1515_p3 = scmp.lt.s32.totalorder %s1513_s11, %s1506_s20 }
  0x2e   : > { %p1510_p10 = pneg %p1509_p9 }
  0x2f   : > { %p1516_p1 = por %p1515_p3, %p1514_p0 }
  0x31   : > { %p1517_p5 = pnand %p1516_p1, %p1510_p10 }
  0x33   : > { %1520 = shalt.err (!%p1517_p5)
}
  0x34   : > { %s1638_s19 = smov 128   ;;  %s1930_s8 = smov 4  }
  0x35   : > { %s1931_s5 = smov 64   ;;  %p1523_p8 = pneg %p1772_p6 }
  0x36   : > { %1307 = dma.hbm_to_vmem [thread:$0]  (!%p1717_p7), %s198_s10, 512, %s200_s21, %s1721_s6, %s1638_s19, %s1931_s5, %s1930_s8  }
  0x37   : > { %s1532_s9 = scalar_lea.vmem %s1765_s4, 2048  ;;  %p1540_p3 = scmp.lt.s32.totalorder %s1765_s4, %s1765_s4 }
  0x38   : > { %p1533_p4 = scmp.ne.s32.totalorder %s1765_s4, %s1532_s9  ;;  %p1541_p5 = scmp.lt.s32.totalorder %s1532_s9, %s1532_s9 }
  0x3a   : > { %p1535_p9 = pnand %p1533_p4, %p1523_p8  ;;  %p1542_p10 = por %p1541_p5, %p1540_p3 }
  0x3c   : > { %p1536_p13 = pneg %p1535_p9 }
  0x3e   : > { %p1543_p0 = pnand %p1542_p10, %p1536_p13 }
  0x40   : > { %1546 = shalt.err (!%p1543_p0)
}
  0x41   : > { %s1639_s29 = smov 8   ;;  %211 = sbr.rel (%p1761_p2) target bundleno = 660 (0x294), region = 32 }
  0x42   : > { %1300 = dma.hbm_to_vmem [thread:$0]  (!%p1772_p6), %s1917_s0, 2048, %s1765_s4, [#allocation4], %s1638_s19, %s1638_s19, %s1639_s29  }
  0x43   : > { %p1932_p7 = scmp.eq.s32.totalorder (!%p1761_p2), %s1735_s22, 0 }
  0x46   : > { %1598 = dma.done.wait (%p1932_p7), [#allocation4], 2048   ;;  %p1933_p1 = pmov %p1932_p7 }
  0x47   : > { %s217_s6 = sand.u32 1, %s1735_s22   ;;  %s1807_s21 = sand.u32 1, %s1615_s13  }
  0x48   : > { %1600 = vsyncadd (%p1933_p1), [#allocation4], 4294965248  ;;  %s1169_s7 = sshll.u32 %s1807_s21, 6  ;;  %s218_s10 = scalar_lea.sflag [#allocation7], %s217_s6 }
  0x49   : > { %s1810_s23 = scalar_lea.vmem [#allocation6], %s1169_s7 }
  0x4a   : > { %1602 = dma.done.wait (%p1745_p11), %s218_s10, 1536  }
  0x4b   : > { %1604 = vsyncadd (%p1745_p11), %s218_s10, 4294965760  ;;  %v1640_v0 = vmov 0   ;;  %v1373_v1 = vld [vmem:[#allocation3 + $0x74] ss:$8 sps:$4 sm:$0xff]   ;;  %v1375_v2 = vld [vmem:[#allocation3 + $0x70] ss:$8 sps:$4 sm:$0xff]  }
  0x4c   : > { %474 = vmatprep.mubr.bf16.mxu0 %v1640_v0  ;;  %955 = vmatprep.mubr.bf16.mxu1 %v1640_v0  ;;  %v1376_v3 = vld [vmem:[#allocation3 + $0x64] ss:$8 sps:$4 sm:$0xff]   ;;  %v1378_v4 = vld [vmem:[#allocation3 + $0x60] ss:$8 sps:$4 sm:$0xff]   ;;  %v1379_v5 = vld [vmem:[#allocation3 + $0x54] ss:$8 sps:$4 sm:$0xff]  }
  0x4d   : > { %442 = vmatprep.subr.bf16.mxu0 %v1373_v1  ;;  %v1381_v6 = vld [vmem:[#allocation3 + $0x50] ss:$8 sps:$4 sm:$0xff]   ;;  %v1382_v7 = vld [vmem:[#allocation3 + $0x44] ss:$8 sps:$4 sm:$0xff]   ;;  %v1384_v8 = vld [vmem:[#allocation3 + $0x40] ss:$8 sps:$4 sm:$0xff]  }
  0x4e   : > { %443 = vmatpush1.bf16.msra.mxu0 %v1375_v2  ;;  %v1385_v9 = vld [vmem:[#allocation3 + $0x34] ss:$8 sps:$4 sm:$0xff]   ;;  %v1387_v10 = vld [vmem:[#allocation3 + $0x30] ss:$8 sps:$4 sm:$0xff]   ;;  %v1388_v11 = vld [vmem:[#allocation3 + $0x24] ss:$8 sps:$4 sm:$0xff]  }
  0x4f   : > { %444 = vmatprep.subr.bf16.mxu0 %v1376_v3  ;;  %v1390_v12 = vld [vmem:[#allocation3 + $0x20] ss:$8 sps:$4 sm:$0xff]   ;;  %v1391_v13 = vld [vmem:[#allocation3 + $0x14] ss:$8 sps:$4 sm:$0xff]   ;;  %v1393_v14 = vld [vmem:[#allocation3 + $0x10] ss:$8 sps:$4 sm:$0xff]  }
  0x50   : > { %v1394_v15 = vld [vmem:[#allocation3 + $0x4] ss:$8 sps:$4 sm:$0xff]   ;;  %v1396_v16 = vld [vmem:[#allocation3] ss:$8 sps:$4 sm:$0xff]   ;;  %v1399_v19 = vld [vmem:[%s1810_s23 + $0x10] sm:$0xff]   ;;  %s1170_s19 = sshll.u32 %s1807_s21, 5 }
  0x51   : > { %v1397_v17 = vld [vmem:[%s1810_s23] sm:$0xff]   ;;  %v1398_v18 = vld [vmem:[%s1810_s23 + $0x8] sm:$0xff]   ;;  %v1400_v20 = vld [vmem:[%s1810_s23 + $0x18] sm:$0xff]   ;;  %s1834_s22 = scalar_lea.vmem [#allocation8], %s1170_s19  ;;  %s1171_s25 = sshll.u32 %s1807_s21, 7 }
  0x52   : > { %445 = vmatpush1.bf16.msra.mxu0 %v1378_v4  ;;  %v1401_v21 = vld [vmem:[%s1810_s23 + $0x20] sm:$0xff]   ;;  %v1402_v22 = vld [vmem:[%s1810_s23 + $0x28] sm:$0xff]   ;;  %v1403_v23 = vld [vmem:[%s1810_s23 + $0x30] sm:$0xff]   ;;  %s1844_s28 = scalar_lea.vmem [#allocation9], %s1171_s25  ;;  %s1286_s4 = sshll.u32 %s1623_s15, 11 }
  0x53   : > { %446 = vmatprep.subr.bf16.mxu0 %v1379_v5  ;;  %v1404_v24 = vld [vmem:[%s1810_s23 + $0x38] sm:$0xff]   ;;  %s1042_s30 = sshll.u32 %s1844_s28, 4  ;;  %s1865_s9 = scalar_lea.hbm %s1920_s3, %s1286_s4  ;;  %s1867_s30 = int_to_ptr.vmem [resolvable:$true] %s1042_s30 }
  0x54   : > { %s1029_s29 = scalar_lea.sflag [#allocation5], %s1807_s21  ;;  %s1547_s11 = scalar_lea.vmem %s1867_s30, 2048 }
  0x55   : > { %p1548_p11 = scmp.ne.s32.totalorder %s1867_s30, %s1547_s11  ;;  %s1641_s15 = smov [#allocation9]  }
  0x56   : > { %447 = vmatpush1.bf16.msra.mxu0 %v1381_v6  ;;  %s1551_s20 = sshll.u32 %s1641_s15, 4  ;;  %s1552_s20 = int_to_ptr.vmem [resolvable:$false] %s1551_s20 }
  0x57   : > { %448 = vmatprep.subr.bf16.mxu0 %v1382_v7  ;;  %p1549_p13 = pnand %p1548_p11, %p1752_p12  ;;  %s1553_s6 = scalar_lea.vmem %s1552_s20, 4096 }
  0x58   : > { %p1554_p6 = scmp.lt.s32.totalorder %s1867_s30, %s1552_s20  ;;  %p1555_p8 = scmp.lt.s32.totalorder %s1553_s6, %s1547_s11 }
  0x59   : > { %p1550_p2 = pneg %p1549_p13 }
  0x5a   : > { %449 = vmatpush1.bf16.msra.mxu0 %v1384_v8  ;;  %p1556_p4 = por %p1555_p8, %p1554_p6 }
  0x5b   : > { %450 = vmatprep.subr.bf16.mxu0 %v1385_v9 }
  0x5c   : > { %p1557_p9 = pnand %p1556_p4, %p1550_p2 }
  0x5e   : > { %451 = vmatpush1.bf16.msra.mxu0 %v1387_v10 }
  0x5f   : > { %452 = vmatprep.subr.bf16.mxu0 %v1388_v11 }
  0x62   : > { %453 = vmatpush1.bf16.msra.mxu0 %v1390_v12 }
  0x63   : > { %454 = vmatprep.subr.bf16.mxu0 %v1391_v13 }
  0x66   : > { %455 = vmatpush1.bf16.msra.mxu0 %v1393_v14 }
  0x67   : > { %456 = vmatprep.subr.bf16.mxu0 %v1394_v15 }
  0x6a   : > { %457 = vmatpush1.bf16.msra.mxu0 %v1396_v16 }
  0x6d   : > { %475 = vmatmul.mubr.bf16.vlgmr.msra.gmra.mxu0 %v1397_v17 }
  0x6e   : > { %484 = vmatprep.mubr.bf16.mxu0 %v1640_v0 }
  0x75   : > { %485 = vmatmul.mubr.bf16.gmra.mxu0 %v1398_v18 }
  0x76   : > { %494 = vmatprep.mubr.bf16.mxu0 %v1640_v0 }
  0x7d   : > { %495 = vmatmul.mubr.bf16.gmra.mxu0 %v1399_v19 }
  0x7e   : > { %504 = vmatprep.mubr.bf16.mxu0 %v1640_v0 }
  0x85   : > { %505 = vmatmul.mubr.bf16.gmra.mxu0 %v1400_v20 }
  0x86   : > { %514 = vmatprep.mubr.bf16.mxu0 %v1640_v0 }
  0x8d   : > { %515 = vmatmul.mubr.bf16.gmra.mxu0 %v1401_v21 }
  0x8e   : > { %524 = vmatprep.mubr.bf16.mxu0 %v1640_v0 }
  0x95   : > { %525 = vmatmul.mubr.bf16.gmra.mxu0 %v1402_v22 }
  0x96   : > { %534 = vmatprep.mubr.bf16.mxu0 %v1640_v0 }
  0x9d   : > { %535 = vmatmul.mubr.bf16.gmra.mxu0 %v1403_v23 }
  0x9e   : > { %544 = vmatprep.mubr.bf16.mxu0 %v1640_v0 }
  0xa5   : > { %545 = vmatmul.mubr.bf16.gmra.mxu0 %v1404_v24 }
 0x12d   : > { %v476_v25 = vpop.f32.mrf.mxu0 }
 0x12e   : > { %v555_v38 = vmax.f32 %v476_v25, 0.0 }
 0x12f   : > { %v478_v26 = vpop.f32.mrf.mxu0 }
 0x130   : > { %v571_v27 = vmul.f32 1.442695, %v478_v26 }
 0x131   : > { %v480_v28 = vpop.f32.mrf.mxu0 }
 0x132   : > { %1433 = vpow2.f32 %v571_v27  ;;  %v556_v46 = vmax.f32 %v480_v28, 0.0 }
 0x133   : > { %v482_v29 = vpop.f32.mrf.mxu0 }
 0x134   : > { %v573_v30 = vmul.f32 1.442695, %v482_v29 }
 0x135   : > { %v486_v31 = vpop.f32.mrf.mxu0 }
 0x136   : > { %1435 = vpow2.f32 %v573_v30  ;;  %v557_v54 = vmax.f32 %v486_v31, 0.0 }
 0x137   : > { %v488_v32 = vpop.f32.mrf.mxu0 }
 0x138   : > { %v575_v33 = vmul.f32 1.442695, %v488_v32 }
 0x139   : > { %v490_v34 = vpop.f32.mrf.mxu0 }
 0x13a   : > { %1437 = vpow2.f32 %v575_v33  ;;  %v558_v62 = vmax.f32 %v490_v34, 0.0 }
 0x13b   : > { %v492_v35 = vpop.f32.mrf.mxu0 }
 0x13c   : > { %v577_v36 = vmul.f32 1.442695, %v492_v35 }
 0x13d   : > { %v496_v37 = vpop.f32.mrf.mxu0 }
 0x13e   : > { %1439 = vpow2.f32 %v577_v36  ;;  %v559_v7 = vmax.f32 %v496_v37, 0.0 }
 0x13f   : > { %v1434_v39 = vpop.eup %1433  ;;  %v498_v40 = vpop.f32.mrf.mxu0 }
 0x140   : > { %v603_v41 = vmul.f32 %v1434_v39, %v555_v38  ;;  %v1270_v42 = vpack.c.bf16 %v1434_v39, %v1434_v39  ;;  %v579_v43 = vmul.f32 1.442695, %v498_v40 }
 0x141   : > { %v500_v44 = vpop.f32.mrf.mxu0 }
 0x142   : > { %v1254_v45 = vpack.c.bf16 %v603_v41, %v603_v41  ;;  %763 = vst [vmem:[#allocation2 + $0x4] sm:$0xf] %v1270_v42  ;;  %1441 = vpow2.f32 %v579_v43  ;;  %v560_v15 = vmax.f32 %v500_v44, 0.0 }
 0x143   : > { %v1436_v47 = vpop.eup %1435  ;;  %v502_v48 = vpop.f32.mrf.mxu0 }
 0x144   : > { %683 = vst [vmem:[#allocation2] sm:$0xf] %v1254_v45  ;;  %v604_v49 = vmul.f32 %v1436_v47, %v556_v46  ;;  %v1271_v50 = vpack.c.bf16 %v1436_v47, %v1436_v47  ;;  %v581_v51 = vmul.f32 1.442695, %v502_v48 }
 0x145   : > { %v506_v52 = vpop.f32.mrf.mxu0 }
 0x146   : > { %v1255_v53 = vpack.c.bf16 %v604_v49, %v604_v49  ;;  %764 = vst [vmem:[#allocation2 + $0xc] sm:$0xf] %v1271_v50  ;;  %1443 = vpow2.f32 %v581_v51  ;;  %v561_v23 = vmax.f32 %v506_v52, 0.0 }
 0x147   : > { %v1438_v55 = vpop.eup %1437  ;;  %v508_v56 = vpop.f32.mrf.mxu0 }
 0x148   : > { %684 = vst [vmem:[#allocation2 + $0x8] sm:$0xf] %v1255_v53  ;;  %v605_v57 = vmul.f32 %v1438_v55, %v557_v54  ;;  %v1272_v58 = vpack.c.bf16 %v1438_v55, %v1438_v55  ;;  %v583_v59 = vmul.f32 1.442695, %v508_v56 }
 0x149   : > { %v510_v60 = vpop.f32.mrf.mxu0 }
 0x14a   : > { %v1256_v61 = vpack.c.bf16 %v605_v57, %v605_v57  ;;  %765 = vst [vmem:[#allocation2 + $0x14] sm:$0xf] %v1272_v58  ;;  %1445 = vpow2.f32 %v583_v59  ;;  %v562_v31 = vmax.f32 %v510_v60, 0.0 }
 0x14b   : > { %v1440_v63 = vpop.eup %1439  ;;  %v512_v1 = vpop.f32.mrf.mxu0 }
 0x14c   : > { %685 = vst [vmem:[#allocation2 + $0x10] sm:$0xf] %v1256_v61  ;;  %v606_v2 = vmul.f32 %v1440_v63, %v558_v62  ;;  %v1273_v3 = vpack.c.bf16 %v1440_v63, %v1440_v63  ;;  %v585_v4 = vmul.f32 1.442695, %v512_v1 }
 0x14d   : > { %v516_v5 = vpop.f32.mrf.mxu0 }
 0x14e   : > { %v1257_v6 = vpack.c.bf16 %v606_v2, %v606_v2  ;;  %766 = vst [vmem:[#allocation2 + $0x1c] sm:$0xf] %v1273_v3  ;;  %1447 = vpow2.f32 %v585_v4  ;;  %v563_v39 = vmax.f32 %v516_v5, 0.0 }
 0x14f   : > { %v1442_v8 = vpop.eup %1441  ;;  %v518_v9 = vpop.f32.mrf.mxu0 }
 0x150   : > { %686 = vst [vmem:[#allocation2 + $0x18] sm:$0xf] %v1257_v6  ;;  %v607_v10 = vmul.f32 %v1442_v8, %v559_v7  ;;  %v1274_v11 = vpack.c.bf16 %v1442_v8, %v1442_v8  ;;  %v587_v12 = vmul.f32 1.442695, %v518_v9 }
 0x151   : > { %v520_v13 = vpop.f32.mrf.mxu0 }
 0x152   : > { %v1258_v14 = vpack.c.bf16 %v607_v10, %v607_v10  ;;  %767 = vst [vmem:[#allocation2 + $0x24] sm:$0xf] %v1274_v11  ;;  %1449 = vpow2.f32 %v587_v12  ;;  %v564_v47 = vmax.f32 %v520_v13, 0.0 }
 0x153   : > { %v1444_v16 = vpop.eup %1443  ;;  %v522_v17 = vpop.f32.mrf.mxu0 }
 0x154   : > { %687 = vst [vmem:[#allocation2 + $0x20] sm:$0xf] %v1258_v14  ;;  %v608_v18 = vmul.f32 %v1444_v16, %v560_v15  ;;  %v1275_v19 = vpack.c.bf16 %v1444_v16, %v1444_v16  ;;  %v589_v20 = vmul.f32 1.442695, %v522_v17 }
 0x155   : > { %v526_v21 = vpop.f32.mrf.mxu0 }
 0x156   : > { %v1259_v22 = vpack.c.bf16 %v608_v18, %v608_v18  ;;  %768 = vst [vmem:[#allocation2 + $0x2c] sm:$0xf] %v1275_v19  ;;  %1451 = vpow2.f32 %v589_v20  ;;  %v565_v55 = vmax.f32 %v526_v21, 0.0 }
 0x157   : > { %v1446_v24 = vpop.eup %1445  ;;  %v528_v25 = vpop.f32.mrf.mxu0 }
 0x158   : > { %688 = vst [vmem:[#allocation2 + $0x28] sm:$0xf] %v1259_v22  ;;  %v609_v26 = vmul.f32 %v1446_v24, %v561_v23  ;;  %v1276_v27 = vpack.c.bf16 %v1446_v24, %v1446_v24  ;;  %v591_v28 = vmul.f32 1.442695, %v528_v25 }
 0x159   : > { %v530_v29 = vpop.f32.mrf.mxu0 }
 0x15a   : > { %v1260_v30 = vpack.c.bf16 %v609_v26, %v609_v26  ;;  %769 = vst [vmem:[#allocation2 + $0x34] sm:$0xf] %v1276_v27  ;;  %1453 = vpow2.f32 %v591_v28  ;;  %v566_v63 = vmax.f32 %v530_v29, 0.0 }
 0x15b   : > { %v1448_v32 = vpop.eup %1447  ;;  %v532_v33 = vpop.f32.mrf.mxu0 }
 0x15c   : > { %689 = vst [vmem:[#allocation2 + $0x30] sm:$0xf] %v1260_v30  ;;  %v610_v34 = vmul.f32 %v1448_v32, %v562_v31  ;;  %v1277_v35 = vpack.c.bf16 %v1448_v32, %v1448_v32  ;;  %v593_v36 = vmul.f32 1.442695, %v532_v33 }
 0x15d   : > { %v536_v37 = vpop.f32.mrf.mxu0 }
 0x15e   : > { %v1261_v38 = vpack.c.bf16 %v610_v34, %v610_v34  ;;  %770 = vst [vmem:[#allocation2 + $0x3c] sm:$0xf] %v1277_v35  ;;  %1455 = vpow2.f32 %v593_v36  ;;  %v567_v7 = vmax.f32 %v536_v37, 0.0  ;;  %v1420_v37 = vld [vmem:[#allocation2 + $0x24] ss:$8 sps:$4 sm:$0xff]  }
 0x15f   : > { %v1450_v40 = vpop.eup %1449  ;;  %v538_v41 = vpop.f32.mrf.mxu0 }
 0x160   : > { %690 = vst [vmem:[#allocation2 + $0x38] sm:$0xf] %v1261_v38  ;;  %v611_v42 = vmul.f32 %v1450_v40, %v563_v39  ;;  %v1278_v43 = vpack.c.bf16 %v1450_v40, %v1450_v40  ;;  %v595_v44 = vmul.f32 1.442695, %v538_v41  ;;  %v1422_v38 = vld [vmem:[#allocation2 + $0x20] ss:$8 sps:$4 sm:$0xff]  }
 0x161   : > { %v540_v45 = vpop.f32.mrf.mxu0  ;;  %v1423_v39 = vld [vmem:[#allocation2 + $0x14] ss:$8 sps:$4 sm:$0xff]   ;;  %v1425_v40 = vld [vmem:[#allocation2 + $0x10] ss:$8 sps:$4 sm:$0xff]   ;;  %v1426_v41 = vld [vmem:[#allocation2 + $0x4] ss:$8 sps:$4 sm:$0xff]  }
 0x162   : > { %v1262_v46 = vpack.c.bf16 %v611_v42, %v611_v42  ;;  %771 = vst [vmem:[#allocation2 + $0x44] sm:$0xf] %v1278_v43  ;;  %1457 = vpow2.f32 %v595_v44  ;;  %v568_v12 = vmax.f32 %v540_v45, 0.0  ;;  %v1428_v42 = vld [vmem:[#allocation2] ss:$8 sps:$4 sm:$0xff]   ;;  %v1431_v45 = vld [vmem:[%s1834_s22 + $0x10] sm:$0xff]  }
 0x163   : > { %v1452_v48 = vpop.eup %1451  ;;  %v542_v49 = vpop.f32.mrf.mxu0  ;;  %v1429_v43 = vld [vmem:[%s1834_s22] sm:$0xff]   ;;  %v1430_v44 = vld [vmem:[%s1834_s22 + $0x8] sm:$0xff]  }
 0x164   : > { %691 = vst [vmem:[#allocation2 + $0x40] sm:$0xf] %v1262_v46  ;;  %v612_v50 = vmul.f32 %v1452_v48, %v564_v47  ;;  %v1279_v51 = vpack.c.bf16 %v1452_v48, %v1452_v48  ;;  %v597_v52 = vmul.f32 1.442695, %v542_v49  ;;  %v1432_v46 = vld [vmem:[%s1834_s22 + $0x18] sm:$0xff]  }
 0x165   : > { %v546_v53 = vpop.f32.mrf.mxu0  ;;  %v1417_v35 = vld [vmem:[#allocation2 + $0x34] ss:$8 sps:$4 sm:$0xff]  }
 0x166   : > { %v1263_v54 = vpack.c.bf16 %v612_v50, %v612_v50  ;;  %772 = vst [vmem:[#allocation2 + $0x4c] sm:$0xf] %v1279_v51  ;;  %1459 = vpow2.f32 %v597_v52  ;;  %v569_v17 = vmax.f32 %v546_v53, 0.0 }
 0x167   : > { %v1454_v56 = vpop.eup %1453  ;;  %v548_v57 = vpop.f32.mrf.mxu0  ;;  %v1419_v36 = vld [vmem:[#allocation2 + $0x30] ss:$8 sps:$4 sm:$0xff]  }
 0x168   : > { %692 = vst [vmem:[#allocation2 + $0x48] sm:$0xf] %v1263_v54  ;;  %v613_v58 = vmul.f32 %v1454_v56, %v565_v55  ;;  %v1280_v59 = vpack.c.bf16 %v1454_v56, %v1454_v56  ;;  %v599_v60 = vmul.f32 1.442695, %v548_v57 }
 0x169   : > { %v550_v61 = vpop.f32.mrf.mxu0 }
 0x16a   : > { %v1264_v62 = vpack.c.bf16 %v613_v58, %v613_v58  ;;  %773 = vst [vmem:[#allocation2 + $0x54] sm:$0xf] %v1280_v59  ;;  %1461 = vpow2.f32 %v599_v60  ;;  %v570_v22 = vmax.f32 %v550_v61, 0.0 }
 0x16b   : > { %v1456_v1 = vpop.eup %1455  ;;  %v552_v2 = vpop.f32.mrf.mxu0 }
 0x16c   : > { %693 = vst [vmem:[#allocation2 + $0x50] sm:$0xf] %v1264_v62  ;;  %v614_v3 = vmul.f32 %v1456_v1, %v566_v63  ;;  %v1281_v4 = vpack.c.bf16 %v1456_v1, %v1456_v1  ;;  %v601_v5 = vmul.f32 1.442695, %v552_v2 }
 0x16d   : > { %v1414_v33 = vld [vmem:[#allocation2 + $0x44] ss:$8 sps:$4 sm:$0xff]  }
 0x16e   : > { %v1265_v6 = vpack.c.bf16 %v614_v3, %v614_v3  ;;  %774 = vst [vmem:[#allocation2 + $0x5c] sm:$0xf] %v1281_v4  ;;  %1463 = vpow2.f32 %v601_v5 }
 0x16f   : > { %v1458_v8 = vpop.eup %1457  ;;  %v1416_v34 = vld [vmem:[#allocation2 + $0x40] ss:$8 sps:$4 sm:$0xff]  }
 0x170   : > { %694 = vst [vmem:[#allocation2 + $0x58] sm:$0xf] %v1265_v6  ;;  %v615_v9 = vmul.f32 %v1458_v8, %v567_v7  ;;  %v1282_v10 = vpack.c.bf16 %v1458_v8, %v1458_v8 }
 0x172   : > { %v1266_v11 = vpack.c.bf16 %v615_v9, %v615_v9  ;;  %775 = vst [vmem:[#allocation2 + $0x64] sm:$0xf] %v1282_v10 }
 0x173   : > { %v1460_v13 = vpop.eup %1459 }
 0x174   : > { %695 = vst [vmem:[#allocation2 + $0x60] sm:$0xf] %v1266_v11  ;;  %v616_v14 = vmul.f32 %v1460_v13, %v568_v12  ;;  %v1283_v15 = vpack.c.bf16 %v1460_v13, %v1460_v13 }
 0x175   : > { %v1411_v31 = vld [vmem:[#allocation2 + $0x54] ss:$8 sps:$4 sm:$0xff]  }
 0x176   : > { %v1267_v16 = vpack.c.bf16 %v616_v14, %v616_v14  ;;  %776 = vst [vmem:[#allocation2 + $0x6c] sm:$0xf] %v1283_v15 }
 0x177   : > { %v1462_v18 = vpop.eup %1461  ;;  %v1413_v32 = vld [vmem:[#allocation2 + $0x50] ss:$8 sps:$4 sm:$0xff]  }
 0x178   : > { %696 = vst [vmem:[#allocation2 + $0x68] sm:$0xf] %v1267_v16  ;;  %v617_v19 = vmul.f32 %v1462_v18, %v569_v17  ;;  %v1284_v20 = vpack.c.bf16 %v1462_v18, %v1462_v18 }
 0x17a   : > { %v1268_v21 = vpack.c.bf16 %v617_v19, %v617_v19  ;;  %777 = vst [vmem:[#allocation2 + $0x74] sm:$0xf] %v1284_v20 }
 0x17b   : > { %v1464_v23 = vpop.eup %1463 }
 0x17c   : > { %697 = vst [vmem:[#allocation2 + $0x70] sm:$0xf] %v1268_v21  ;;  %v618_v24 = vmul.f32 %v1464_v23, %v570_v22  ;;  %v1285_v25 = vpack.c.bf16 %v1464_v23, %v1464_v23 }
 0x17d   : > { %v1408_v29 = vld [vmem:[#allocation2 + $0x64] ss:$8 sps:$4 sm:$0xff]  }
 0x17e   : > { %v1269_v26 = vpack.c.bf16 %v618_v24, %v618_v24  ;;  %778 = vst [vmem:[#allocation2 + $0x7c] sm:$0xf] %v1285_v25 }
 0x17f   : > { %v1410_v30 = vld [vmem:[#allocation2 + $0x60] ss:$8 sps:$4 sm:$0xff]  }
 0x180   : > { %698 = vst [vmem:[#allocation2 + $0x78] sm:$0xf] %v1269_v26 }
 0x185   : > { %v1405_v27 = vld [vmem:[#allocation2 + $0x74] ss:$8 sps:$4 sm:$0xff]  }
 0x186   : > { %923 = vmatprep.subr.bf16.mxu1 %v1405_v27 }
 0x187   : > { %v1407_v28 = vld [vmem:[#allocation2 + $0x70] ss:$8 sps:$4 sm:$0xff]  }
 0x188   : > { %924 = vmatpush1.bf16.msra.mxu1 %v1407_v28 }
 0x189   : > { %925 = vmatprep.subr.bf16.mxu1 %v1408_v29 }
 0x18c   : > { %926 = vmatpush1.bf16.msra.mxu1 %v1410_v30 }
 0x18d   : > { %927 = vmatprep.subr.bf16.mxu1 %v1411_v31 }
 0x190   : > { %928 = vmatpush1.bf16.msra.mxu1 %v1413_v32 }
 0x191   : > { %929 = vmatprep.subr.bf16.mxu1 %v1414_v33 }
 0x194   : > { %930 = vmatpush1.bf16.msra.mxu1 %v1416_v34 }
 0x195   : > { %931 = vmatprep.subr.bf16.mxu1 %v1417_v35 }
 0x198   : > { %932 = vmatpush1.bf16.msra.mxu1 %v1419_v36 }
 0x199   : > { %933 = vmatprep.subr.bf16.mxu1 %v1420_v37 }
 0x19c   : > { %934 = vmatpush1.bf16.msra.mxu1 %v1422_v38 }
 0x19d   : > { %935 = vmatprep.subr.bf16.mxu1 %v1423_v39 }
 0x1a0   : > { %936 = vmatpush1.bf16.msra.mxu1 %v1425_v40 }
 0x1a1   : > { %937 = vmatprep.subr.bf16.mxu1 %v1426_v41 }
 0x1a4   : > { %938 = vmatpush1.bf16.msra.mxu1 %v1428_v42 }
 0x1a7   : > { %956 = vmatmul.mubr.bf16.vlgmr.msra.gmra.mxu1 %v1429_v43 }
 0x1a8   : > { %965 = vmatprep.mubr.bf16.mxu1 %v1640_v0 }
 0x1af   : > { %966 = vmatmul.mubr.bf16.gmra.mxu1 %v1430_v44 }
 0x1b0   : > { %975 = vmatprep.mubr.bf16.mxu1 %v1640_v0 }
 0x1b7   : > { %976 = vmatmul.mubr.bf16.gmra.mxu1 %v1431_v45 }
 0x1b8   : > { %985 = vmatprep.mubr.bf16.mxu1 %v1640_v0 }
 0x1bf   : > { %986 = vmatmul.mubr.bf16.gmra.mxu1 %v1432_v46 }
 0x267   : > { %v957_v47 = vpop.f32.mrf.mxu1 }
 0x268   : > { %1012 = vst [vmem:[%s1844_s28] sm:$0xff] %v957_v47 }
 0x269   : > { %v959_v48 = vpop.f32.mrf.mxu1 }
 0x26a   : > { %1013 = vst [vmem:[%s1844_s28 + $0x8] sm:$0xff] %v959_v48 }
 0x26b   : > { %v961_v49 = vpop.f32.mrf.mxu1 }
 0x26c   : > { %1014 = vst [vmem:[%s1844_s28 + $0x10] sm:$0xff] %v961_v49 }
 0x26d   : > { %v963_v0 = vpop.f32.mrf.mxu1 }
 0x26e   : > { %1015 = vst [vmem:[%s1844_s28 + $0x18] sm:$0xff] %v963_v0 }
 0x26f   : > { %v967_v50 = vpop.f32.mrf.mxu1 }
 0x270   : > { %1016 = vst [vmem:[%s1844_s28 + $0x20] sm:$0xff] %v967_v50 }
 0x271   : > { %v969_v51 = vpop.f32.mrf.mxu1 }
 0x272   : > { %1017 = vst [vmem:[%s1844_s28 + $0x28] sm:$0xff] %v969_v51 }
 0x273   : > { %v971_v52 = vpop.f32.mrf.mxu1 }
 0x274   : > { %1018 = vst [vmem:[%s1844_s28 + $0x30] sm:$0xff] %v971_v52 }
 0x275   : > { %v973_v53 = vpop.f32.mrf.mxu1 }
 0x276   : > { %1019 = vst [vmem:[%s1844_s28 + $0x38] sm:$0xff] %v973_v53 }
 0x277   : > { %v977_v54 = vpop.f32.mrf.mxu1 }
 0x278   : > { %1020 = vst [vmem:[%s1844_s28 + $0x40] sm:$0xff] %v977_v54 }
 0x279   : > { %v979_v55 = vpop.f32.mrf.mxu1 }
 0x27a   : > { %1021 = vst [vmem:[%s1844_s28 + $0x48] sm:$0xff] %v979_v55 }
 0x27b   : > { %v981_v56 = vpop.f32.mrf.mxu1 }
 0x27c   : > { %1022 = vst [vmem:[%s1844_s28 + $0x50] sm:$0xff] %v981_v56 }
 0x27d   : > { %v983_v57 = vpop.f32.mrf.mxu1 }
 0x27e   : > { %1023 = vst [vmem:[%s1844_s28 + $0x58] sm:$0xff] %v983_v57 }
 0x27f   : > { %v987_v58 = vpop.f32.mrf.mxu1 }
 0x280   : > { %1024 = vst [vmem:[%s1844_s28 + $0x60] sm:$0xff] %v987_v58 }
 0x281   : > { %v989_v59 = vpop.f32.mrf.mxu1 }
 0x282   : > { %1025 = vst [vmem:[%s1844_s28 + $0x68] sm:$0xff] %v989_v59 }
 0x283   : > { %v991_v60 = vpop.f32.mrf.mxu1 }
 0x284   : > { %1026 = vst [vmem:[%s1844_s28 + $0x70] sm:$0xff] %v991_v60 }
 0x285   : > { %v993_v61 = vpop.f32.mrf.mxu1 }
 0x286   : > { %1027 = vst [vmem:[%s1844_s28 + $0x78] sm:$0xff] %v993_v61 }
 0x287   : > { %1560 = shalt.err (!%p1557_p9)
}
 0x288   : > { %s1561_s7 = scalar_lea.hbm %s1865_s9, 2048  ;;  %s1565_s19 = scalar_lea.hbm %s1920_s3, 4096 }
 0x289   : > { %p1562_p3 = scmp.ne.s32.totalorder %s1865_s9, %s1561_s7  ;;  %p1566_p0 = scmp.lt.s32.totalorder %s1865_s9, %s1920_s3 }
 0x28a   : > { %p1567_p7 = scmp.lt.s32.totalorder %s1565_s19, %s1561_s7 }
 0x28b   : > { %p1563_p5 = pnand %p1562_p3, %p1752_p12 }
 0x28c   : > { %p1568_p1 = por %p1567_p7, %p1566_p0 }
 0x28d   : > { %p1564_p10 = pneg %p1563_p5 }
 0x28f   : > { %p1569_p11 = pnand %p1568_p1, %p1564_p10 }
 0x291   : > { %1572 = shalt.err (!%p1569_p11)
}
 0x292   : > { %s1642_s28 = smov 256   ;;  %s1643_s4 = smov 16  }
 0x293   : > { %1295 = dma.vmem_to_hbm [thread:$0]  (%p1752_p12), %s1867_s30, 2048, %s1865_s9, %s1029_s29, %s1642_s28, %s1642_s28, %s1643_s4  }
 0x294 PF: > { %s1057_s8 = sand.u32 1, %s1611_s12   ;;  %p1934_p13 = scmp.ne.s32.totalorder %s1927_s27, 0 }
 0x295   : > { %p1935_p2 = scmp.ge.s32.totalorder %s1631_s17, 2  ;;  %s1058_s5 = scalar_lea.sflag [#allocation5], %s1057_s8 }
 0x297   : > { %p1309_p6 = pnand %p1935_p2, %p1934_p13 }
 0x299   : > { %p1310_p8 = pneg %p1309_p6 }
 0x29b   : > { %1606 = dma.done.wait (%p1310_p8), %s1058_s5, 2048  }
 0x29c   : > { %1608 = vsyncadd (%p1310_p8), %s1058_s5, 4294965248  ;;  %s20_s17 = sadd.s32 1, %s1631_s17   ;;  %s1936_s12 = smov %s1615_s13 }
 0x29d   : > { %p17_p4 = scmp.ge.s32.totalorder %s20_s17, 4   ;;  %s1937_s13 = smov %s1619_s14 }
 0x29e   : > { %s1938_s14 = smov %s1712_s24  ;;  %s1939_s15 = smov %s1627_s16 }
 0x29f   : > { %s1940_s16 = smov %s1942_s18  ;;  %19 = sbr.rel (!%p17_p4) target bundleno = 7 (0x7), region = 97 }
 0x2a4   :  { %1063 = vsyncpa [#allocation4], 1 }
 0x2a5   :  { %1065 = vsyncpa [#allocation4 + $0x1], 1 }
 0x2a6   :  { %1066 = vsyncpa [#allocation7], 1 }
 0x2a7   :  { %1068 = vsyncpa [#allocation7 + $0x1], 1 }
 0x2a8   :  { %1069 = vsyncpa [#allocation5], 1 }
 0x2a9   :  { %1071 = vsyncpa [#allocation5 + $0x1], 1 }

</bundles_post_ra>
